<compile_context>
chip_gen: v5e
topology: v5e:2x2
jax: 0.10.0
libtpu: 0.0.40
codegen_flags: <defaults>
</compile_context>

<pallas_src>
import functools

import jax
import jax.numpy as jnp
from jax.experimental import pallas as pl
from jax.experimental.pallas import tpu as pltpu


def _scores_kernel(*refs, d_lane, tile_lanes, nd_per_core, needs_mask):
    """Per-batch dot products of `reference` against all K tensors.

    refs = (ref_ref, t_0 .. t_{K-1}, s_0 .. s_{K-1})
      ref_ref, t_k : (B, S, tile_lanes) current D-tile
      s_k          : (1, B, 1) f32 resident accumulator (per core, per tensor)
    """
    n = (len(refs) - 1) // 2
    ref_ref = refs[0]
    t_refs = refs[1:1 + n]
    s_refs = refs[1 + n:]

    j = pl.program_id(1)

    @pl.when(j == 0)
    def _init():
        for s_ref in s_refs:
            s_ref[...] = jnp.zeros_like(s_ref)

    ref_f = ref_ref[...].astype(jnp.float32)          # (B, S, T)

    keep = None
    if needs_mask:
        c = pl.program_id(0)
        tile_idx = c * nd_per_core + j                # logical D-tile index
        valid = d_lane - tile_idx * tile_lanes        # <=0 for overflow tiles
        lane = jax.lax.broadcasted_iota(jnp.int32, ref_f.shape, 2)
        keep = lane < valid

    for t_ref, s_ref in zip(t_refs, s_refs):
        prod = ref_f * t_ref[...].astype(jnp.float32)
        if needs_mask:
            prod = jnp.where(keep, prod, 0.0)
        r = jnp.sum(prod, axis=2)                     # (B, S)   lane reduce
        p = jnp.sum(r, axis=1, keepdims=True)         # (B, 1)   lane reduce
        s_ref[...] += p[None, :, :]                   # (1, B, 1)


def _scale_kernel(*refs):
    """Scale each tensor by its per-batch softmax weight (f32 math, cast on store).

    refs = (w_ref, t_0 .. t_{K-1}, o_0 .. o_{K-1})
      w_ref : (K, B, 1) f32 softmax weights
      t_k   : (B, S, tile_lanes) input tile
      o_k   : (B, S, tile_lanes) output tile
    """
    n = (len(refs) - 1) // 2
    w_ref = refs[0]
    t_refs = refs[1:1 + n]
    o_refs = refs[1 + n:]

    w = w_ref[...]                                    # (K, B, 1) f32
    for k in range(n):
        wk = w[k][:, :, None]                         # (B, 1, 1)
        o_refs[k][...] = (t_refs[k][...].astype(jnp.float32) * wk).astype(
            o_refs[k].dtype)


def attention_weighted_sum(tensor_list, reference_tensor):
    """Pallas equivalent of AttentionWeightedSum.forward.

    tensor_list: list of K arrays, each (B, C, H, W) (any trailing dims work)
    reference_tensor: (B, C, H, W)
    Returns a list of K arrays with the same shapes as the inputs.
    """
    K = len(tensor_list)
    if K == 0:
        return []

    full_shape = tuple(reference_tensor.shape)
    B = full_shape[0]
    D = 1
    for s in full_shape[1:]:
        D *= s
    dtype = reference_tensor.dtype
    itemsize = jnp.dtype(dtype).itemsize

    # Sublane fold: view (B, D) as (B, 8, D/8) when possible so all 8 sublanes
    # of every vreg are live even for tiny B.  These reshapes are free.
    S = 8 if (D % 8 == 0 and D >= 8) else 1
    d_lane = D // S

    ref3 = jnp.reshape(reference_tensor, (B, S, d_lane))
    ts = [jnp.reshape(t, (B, S, d_lane)) for t in tensor_list]

    # ---- tile sizing (VMEM-budgeted for v7x's 64 MiB, lane-multiple of 128) --
    VMEM_BUDGET = 24 << 20            # bytes of block buffers we allow in flight
    MAX_TILE = 4 << 20                # per-block cap; bigger buys nothing
    buf_mult = max(2 + 3 * K, 5 * K)  # worst-case buffers: k1 vs k2 (incl. Buffered(3))
    row_bytes = max(1, B * S * itemsize)
    tile_bytes = min(MAX_TILE, max(row_bytes * 128, VMEM_BUDGET // buf_mult))
    tile_lanes = max(128, (tile_bytes // row_bytes) // 128 * 128)
    if tile_lanes >= d_lane:
        tile_lanes = d_lane           # single full-extent tile
        num_d = 1
    else:
        num_d = pl.cdiv(d_lane, tile_lanes)

    NC = 2 if num_d >= 2 else 1                       # split D-tiles across 2 TCs
    nd_per_core = pl.cdiv(num_d, NC)
    needs_mask = (d_lane % tile_lanes != 0) or (NC * nd_per_core != num_d)

    block_bytes = B * S * tile_lanes * itemsize
    footprint = buf_mult * block_bytes
    vmem_limit = int(min(max(footprint + (8 << 20), 32 << 20), 48 << 20))

    tile_block = (B, S, tile_lanes)

    # ---- Kernel 1: per-batch scores (ref read once, K tensors per step) -----
    def in_idx1(c, j):
        # Clamp the overflow tile (odd num_d split across 2 cores); its
        # contribution is masked to zero inside the kernel.
        return (0, 0, jnp.minimum(c * nd_per_core + j, num_d - 1))

    ref_spec = pl.BlockSpec(tile_block, in_idx1)
    if num_d >= 3:
        t_spec1 = pl.BlockSpec(tile_block, in_idx1, pipeline_mode=pl.Buffered(3))
    else:
        t_spec1 = pl.BlockSpec(tile_block, in_idx1)
    score_spec = pl.BlockSpec((1, B, 1), lambda c, j: (c, 0, 0))

    kernel1 = functools.partial(
        _scores_kernel, d_lane=d_lane, tile_lanes=tile_lanes,
        nd_per_core=nd_per_core, needs_mask=needs_mask)

    partials = pl.pallas_call(
        kernel1,
        out_shape=tuple(jax.ShapeDtypeStruct((NC, B, 1), jnp.float32)
                        for _ in range(K)),
        grid_spec=pltpu.PrefetchScalarGridSpec(
            num_scalar_prefetch=0,
            grid=(NC, nd_per_core),
            in_specs=[ref_spec] + [t_spec1] * K,
            out_specs=[score_spec] * K,
        ),
        compiler_params=pltpu.CompilerParams(
            dimension_semantics=("parallel", "arbitrary"),
            vmem_limit_bytes=vmem_limit),
        cost_estimate=pl.CostEstimate(
            flops=2 * K * B * D,
            transcendentals=0,
            bytes_accessed=(K + 1) * B * D * itemsize + NC * K * B * 4),
    )(ref3, *ts)

    # ---- Softmax over the batch axis (K*B values: trivial, done in jnp) -----
    scores = jnp.stack(partials, axis=0).sum(axis=1)   # (K, B, 1) f32
    weights = jax.nn.softmax(scores, axis=1)           # softmax over batch dim

    # ---- Kernel 2: broadcast scale, exact-shape outputs, f32 math -----------
    def in_idx2(j):
        return (0, 0, j)

    if num_d >= 3:
        t_spec2 = pl.BlockSpec(tile_block, in_idx2, pipeline_mode=pl.Buffered(3))
    else:
        t_spec2 = pl.BlockSpec(tile_block, in_idx2)
    w_spec = pl.BlockSpec((K, B, 1), lambda j: (0, 0, 0))
    o_spec = pl.BlockSpec(tile_block, in_idx2)

    outs = pl.pallas_call(
        _scale_kernel,
        out_shape=tuple(jax.ShapeDtypeStruct((B, S, d_lane), tensor_list[k].dtype)
                        for k in range(K)),
        grid_spec=pltpu.PrefetchScalarGridSpec(
            num_scalar_prefetch=0,
            grid=(num_d,),
            in_specs=[w_spec] + [t_spec2] * K,
            out_specs=[o_spec] * K,
        ),
        compiler_params=pltpu.CompilerParams(
            dimension_semantics=("parallel",),
            vmem_limit_bytes=vmem_limit),
        cost_estimate=pl.CostEstimate(
            flops=K * B * D,
            transcendentals=0,
            bytes_accessed=2 * K * B * D * itemsize + K * B * 4),
    )(weights, *ts)

    return [jnp.reshape(o, full_shape) for o in outs]


def _reference(tensor_list, reference_tensor):
    outs = []
    for tensor in tensor_list:
        scores = jnp.sum(reference_tensor * tensor, axis=(1, 2, 3), keepdims=True)
        w = jax.nn.softmax(scores, axis=0)
        outs.append(tensor * w)
    return outs


if __name__ == "__main__":
    B, C, H, W = 2, 4, 16, 16
    K = 3

    key = jax.random.PRNGKey(0)
    keys = jax.random.split(key, K + 1)
    reference_tensor = jax.random.normal(keys[0], (B, C, H, W), dtype=jnp.float32)
    tensor_list = [
        jax.random.normal(keys[i + 1], (B, C, H, W), dtype=jnp.float32)
        for i in range(K)
    ]

    outs = attention_weighted_sum(tensor_list, reference_tensor)
    outs = jax.block_until_ready(outs)

    refs = _reference(tensor_list, reference_tensor)
    assert len(outs) == K
    for o, r in zip(outs, refs):
        assert o.shape == (B, C, H, W)
        assert jnp.allclose(o, r, atol=1e-4, rtol=1e-4), float(jnp.max(jnp.abs(o - r)))

    print("KERNEL_OK")
</pallas_src>

<mosaic_0001>
module attributes {stable_mosaic.version = 11 : i64} {
  func.func @_scores_kernel(%arg0: i32, %arg1: i32, %arg2: memref<2x8x128xf32, #tpu.memory_space<vmem>>, %arg3: memref<2x8x128xf32, #tpu.memory_space<vmem>>, %arg4: memref<2x8x128xf32, #tpu.memory_space<vmem>>, %arg5: memref<2x8x128xf32, #tpu.memory_space<vmem>>, %arg6: memref<1x2x1xf32, #tpu.memory_space<vmem>>, %arg7: memref<1x2x1xf32, #tpu.memory_space<vmem>>, %arg8: memref<1x2x1xf32, #tpu.memory_space<vmem>>) attributes {dimension_semantics = [#tpu.dimension_semantics<parallel>, #tpu.dimension_semantics<arbitrary>], iteration_bounds = array<i64: 1, 1>, scalar_prefetch = 0 : i64, scratch_operands = 0 : i64, tpu.core_type = #tpu.core_type<tc>, window_params = [{transform_indices = @transform_0, window_bounds = array<i64: 2, 8, 128>}, {transform_indices = @transform_1, window_bounds = array<i64: 2, 8, 128>}, {transform_indices = @transform_2, window_bounds = array<i64: 2, 8, 128>}, {transform_indices = @transform_3, window_bounds = array<i64: 2, 8, 128>}, {transform_indices = @transform_4, window_bounds = array<i64: 1, 2, 1>}, {transform_indices = @transform_5, window_bounds = array<i64: 1, 2, 1>}, {transform_indices = @transform_6, window_bounds = array<i64: 1, 2, 1>}]} {
    %c0_i32 = arith.constant 0 : i32
    %0 = arith.cmpi eq, %arg1, %c0_i32 : i32
    %1 = arith.extui %0 : i1 to i32
    %c0_i32_0 = arith.constant 0 : i32
    %2 = arith.cmpi ne, %1, %c0_i32_0 : i32
    scf.if %2 {
      %cst_35 = arith.constant 0.000000e+00 : f32
      %31 = vector.broadcast %cst_35 : f32 to vector<1x2x1xf32>
      %c0_36 = arith.constant 0 : index
      %c0_37 = arith.constant 0 : index
      %c0_38 = arith.constant 0 : index
      %32 = vector.load %arg6[%c0_36, %c0_37, %c0_38] : memref<1x2x1xf32, #tpu.memory_space<vmem>>, vector<1x2x1xf32>
      tpu.vector_store %arg6[%c0_36, %c0_37, %c0_38], %31 {strides = array<i32>} : memref<1x2x1xf32, #tpu.memory_space<vmem>>, vector<1x2x1xf32>,
      %cst_39 = arith.constant 0.000000e+00 : f32
      %33 = vector.broadcast %cst_39 : f32 to vector<1x2x1xf32>
      %c0_40 = arith.constant 0 : index
      %c0_41 = arith.constant 0 : index
      %c0_42 = arith.constant 0 : index
      %34 = vector.load %arg7[%c0_40, %c0_41, %c0_42] : memref<1x2x1xf32, #tpu.memory_space<vmem>>, vector<1x2x1xf32>
      tpu.vector_store %arg7[%c0_40, %c0_41, %c0_42], %33 {strides = array<i32>} : memref<1x2x1xf32, #tpu.memory_space<vmem>>, vector<1x2x1xf32>,
      %cst_43 = arith.constant 0.000000e+00 : f32
      %35 = vector.broadcast %cst_43 : f32 to vector<1x2x1xf32>
      %c0_44 = arith.constant 0 : index
      %c0_45 = arith.constant 0 : index
      %c0_46 = arith.constant 0 : index
      %36 = vector.load %arg8[%c0_44, %c0_45, %c0_46] : memref<1x2x1xf32, #tpu.memory_space<vmem>>, vector<1x2x1xf32>
      tpu.vector_store %arg8[%c0_44, %c0_45, %c0_46], %35 {strides = array<i32>} : memref<1x2x1xf32, #tpu.memory_space<vmem>>, vector<1x2x1xf32>,
    } else {
    }
    %c0 = arith.constant 0 : index
    %c0_1 = arith.constant 0 : index
    %c0_2 = arith.constant 0 : index
    %3 = vector.load %arg2[%c0, %c0_1, %c0_2] : memref<2x8x128xf32, #tpu.memory_space<vmem>>, vector<2x8x128xf32>
    %c0_3 = arith.constant 0 : index
    %c0_4 = arith.constant 0 : index
    %c0_5 = arith.constant 0 : index
    %4 = vector.load %arg3[%c0_3, %c0_4, %c0_5] : memref<2x8x128xf32, #tpu.memory_space<vmem>>, vector<2x8x128xf32>
    %5 = arith.mulf %3, %4 : vector<2x8x128xf32>
    %cst = arith.constant dense<0.000000e+00> : vector<2x8xf32>
    %6 = vector.multi_reduction <add>, %5, %cst [2] : vector<2x8x128xf32> to vector<2x8xf32>
    %cst_6 = arith.constant dense<0.000000e+00> : vector<2xf32>
    %7 = vector.multi_reduction <add>, %6, %cst_6 [1] : vector<2x8xf32> to vector<2xf32>
    %8 = vector.shape_cast %7 : vector<2xf32> to vector<2x1xf32>
    %c0_7 = arith.constant 0 : index
    %c0_8 = arith.constant 0 : index
    %c0_9 = arith.constant 0 : index
    %9 = vector.load %arg6[%c0_7, %c0_8, %c0_9] : memref<1x2x1xf32, #tpu.memory_space<vmem>>, vector<1x2x1xf32>
    %10 = vector.shape_cast %8 : vector<2x1xf32> to vector<1x2x1xf32>
    %11 = arith.addf %9, %10 : vector<1x2x1xf32>
    %c0_10 = arith.constant 0 : index
    %c0_11 = arith.constant 0 : index
    %c0_12 = arith.constant 0 : index
    %12 = vector.load %arg6[%c0_10, %c0_11, %c0_12] : memref<1x2x1xf32, #tpu.memory_space<vmem>>, vector<1x2x1xf32>
    tpu.vector_store %arg6[%c0_10, %c0_11, %c0_12], %11 {strides = array<i32>} : memref<1x2x1xf32, #tpu.memory_space<vmem>>, vector<1x2x1xf32>,
    %c0_13 = arith.constant 0 : index
    %c0_14 = arith.constant 0 : index
    %c0_15 = arith.constant 0 : index
    %13 = vector.load %arg4[%c0_13, %c0_14, %c0_15] : memref<2x8x128xf32, #tpu.memory_space<vmem>>, vector<2x8x128xf32>
    %14 = arith.mulf %3, %13 : vector<2x8x128xf32>
    %cst_16 = arith.constant dense<0.000000e+00> : vector<2x8xf32>
    %15 = vector.multi_reduction <add>, %14, %cst_16 [2] : vector<2x8x128xf32> to vector<2x8xf32>
    %cst_17 = arith.constant dense<0.000000e+00> : vector<2xf32>
    %16 = vector.multi_reduction <add>, %15, %cst_17 [1] : vector<2x8xf32> to vector<2xf32>
    %17 = vector.shape_cast %16 : vector<2xf32> to vector<2x1xf32>
    %c0_18 = arith.constant 0 : index
    %c0_19 = arith.constant 0 : index
    %c0_20 = arith.constant 0 : index
    %18 = vector.load %arg7[%c0_18, %c0_19, %c0_20] : memref<1x2x1xf32, #tpu.memory_space<vmem>>, vector<1x2x1xf32>
    %19 = vector.shape_cast %17 : vector<2x1xf32> to vector<1x2x1xf32>
    %20 = arith.addf %18, %19 : vector<1x2x1xf32>
    %c0_21 = arith.constant 0 : index
    %c0_22 = arith.constant 0 : index
    %c0_23 = arith.constant 0 : index
    %21 = vector.load %arg7[%c0_21, %c0_22, %c0_23] : memref<1x2x1xf32, #tpu.memory_space<vmem>>, vector<1x2x1xf32>
    tpu.vector_store %arg7[%c0_21, %c0_22, %c0_23], %20 {strides = array<i32>} : memref<1x2x1xf32, #tpu.memory_space<vmem>>, vector<1x2x1xf32>,
    %c0_24 = arith.constant 0 : index
    %c0_25 = arith.constant 0 : index
    %c0_26 = arith.constant 0 : index
    %22 = vector.load %arg5[%c0_24, %c0_25, %c0_26] : memref<2x8x128xf32, #tpu.memory_space<vmem>>, vector<2x8x128xf32>
    %23 = arith.mulf %3, %22 : vector<2x8x128xf32>
    %cst_27 = arith.constant dense<0.000000e+00> : vector<2x8xf32>
    %24 = vector.multi_reduction <add>, %23, %cst_27 [2] : vector<2x8x128xf32> to vector<2x8xf32>
    %cst_28 = arith.constant dense<0.000000e+00> : vector<2xf32>
    %25 = vector.multi_reduction <add>, %24, %cst_28 [1] : vector<2x8xf32> to vector<2xf32>
    %26 = vector.shape_cast %25 : vector<2xf32> to vector<2x1xf32>
    %c0_29 = arith.constant 0 : index
    %c0_30 = arith.constant 0 : index
    %c0_31 = arith.constant 0 : index
    %27 = vector.load %arg8[%c0_29, %c0_30, %c0_31] : memref<1x2x1xf32, #tpu.memory_space<vmem>>, vector<1x2x1xf32>
    %28 = vector.shape_cast %26 : vector<2x1xf32> to vector<1x2x1xf32>
    %29 = arith.addf %27, %28 : vector<1x2x1xf32>
    %c0_32 = arith.constant 0 : index
    %c0_33 = arith.constant 0 : index
    %c0_34 = arith.constant 0 : index
    %30 = vector.load %arg8[%c0_32, %c0_33, %c0_34] : memref<1x2x1xf32, #tpu.memory_space<vmem>>, vector<1x2x1xf32>
    tpu.vector_store %arg8[%c0_32, %c0_33, %c0_34], %29 {strides = array<i32>} : memref<1x2x1xf32, #tpu.memory_space<vmem>>, vector<1x2x1xf32>,
    return
  }
  func.func @transform_0(%arg0: i32, %arg1: i32) -> (i32, i32, i32) {
    %c1_i32 = arith.constant 1 : i32
    %0 = arith.muli %arg0, %c1_i32 : i32
    %1 = arith.addi %0, %arg1 : i32
    %c0_i32 = arith.constant 0 : i32
    %2 = arith.minsi %1, %c0_i32 : i32
    %c0_i32_0 = arith.constant 0 : i32
    %c0_i32_1 = arith.constant 0 : i32
    %c0_i32_2 = arith.constant 0 : i32
    return %c0_i32_0, %c0_i32_1, %2 : i32, i32, i32
  }
  func.func @transform_1(%arg0: i32, %arg1: i32) -> (i32, i32, i32) {
    %c1_i32 = arith.constant 1 : i32
    %0 = arith.muli %arg0, %c1_i32 : i32
    %1 = arith.addi %0, %arg1 : i32
    %c0_i32 = arith.constant 0 : i32
    %2 = arith.minsi %1, %c0_i32 : i32
    %c0_i32_0 = arith.constant 0 : i32
    %c0_i32_1 = arith.constant 0 : i32
    %c0_i32_2 = arith.constant 0 : i32
    return %c0_i32_0, %c0_i32_1, %2 : i32, i32, i32
  }
  func.func @transform_2(%arg0: i32, %arg1: i32) -> (i32, i32, i32) {
    %c1_i32 = arith.constant 1 : i32
    %0 = arith.muli %arg0, %c1_i32 : i32
    %1 = arith.addi %0, %arg1 : i32
    %c0_i32 = arith.constant 0 : i32
    %2 = arith.minsi %1, %c0_i32 : i32
    %c0_i32_0 = arith.constant 0 : i32
    %c0_i32_1 = arith.constant 0 : i32
    %c0_i32_2 = arith.constant 0 : i32
    return %c0_i32_0, %c0_i32_1, %2 : i32, i32, i32
  }
  func.func @transform_3(%arg0: i32, %arg1: i32) -> (i32, i32, i32) {
    %c1_i32 = arith.constant 1 : i32
    %0 = arith.muli %arg0, %c1_i32 : i32
    %1 = arith.addi %0, %arg1 : i32
    %c0_i32 = arith.constant 0 : i32
    %2 = arith.minsi %1, %c0_i32 : i32
    %c0_i32_0 = arith.constant 0 : i32
    %c0_i32_1 = arith.constant 0 : i32
    %c0_i32_2 = arith.constant 0 : i32
    return %c0_i32_0, %c0_i32_1, %2 : i32, i32, i32
  }
  func.func @transform_4(%arg0: i32, %arg1: i32) -> (i32, i32, i32) {
    %c0_i32 = arith.constant 0 : i32
    %c0_i32_0 = arith.constant 0 : i32
    %c0_i32_1 = arith.constant 0 : i32
    return %arg0, %c0_i32, %c0_i32_0 : i32, i32, i32
  }
  func.func @transform_5(%arg0: i32, %arg1: i32) -> (i32, i32, i32) {
    %c0_i32 = arith.constant 0 : i32
    %c0_i32_0 = arith.constant 0 : i32
    %c0_i32_1 = arith.constant 0 : i32
    return %arg0, %c0_i32, %c0_i32_0 : i32, i32, i32
  }
  func.func @transform_6(%arg0: i32, %arg1: i32) -> (i32, i32, i32) {
    %c0_i32 = arith.constant 0 : i32
    %c0_i32_0 = arith.constant 0 : i32
    %c0_i32_1 = arith.constant 0 : i32
    return %arg0, %c0_i32, %c0_i32_0 : i32, i32, i32
  }
}

</mosaic_0001>

<bundles_post_ra>
// kernel: tpu_custom_call.1
= control target key start
LH: loop header
LB: loop body
LE: loop exit
PB: predicated region body
PF: predicated region fallthrough
CT: control target
= control target key end

     0   :  { %12 = vsyncpa [#allocation3], 0  ;;  %s409_s0 = inlined_call_operand.hbm [shape: f32[2,8,128], index: 0, kind: input, shape index: {}]   ;;  %s410_s1 = inlined_call_operand.hbm [shape: f32[2,8,128], index: 1, kind: input, shape index: {}]   ;;  %s411_s2 = inlined_call_operand.hbm [shape: f32[2,8,128], index: 2, kind: input, shape index: {}]   ;;  %s412_s3 = inlined_call_operand.hbm [shape: f32[2,8,128], index: 3, kind: input, shape index: {}]   ;;  %s413_s4 = inlined_call_operand.vmem [shape: f32[1,2,1], index: 4, kind: output, shape index: {0}]   ;;  %s414_s5 = inlined_call_operand.vmem [shape: f32[1,2,1], index: 5, kind: output, shape index: {1}]   ;;  %s415_s6 = inlined_call_operand.vmem [shape: f32[1,2,1], index: 6, kind: output, shape index: {2}]  }
   0x1   :  { %13 = vsyncpa [#allocation5], 0 }
   0x2   :  { %14 = vsyncpa [#allocation8], 0  ;;  %s42_s23 = sshll.u32 %s410_s1, 4  ;;  %s322_s24 = smov [#allocation4]   ;;  %s43_s23 = int_to_ptr.hbm [resolvable:$true] %s42_s23 }
   0x3   :  { %s44_s25 = sshll.u32 %s322_s24, 4  ;;  %s24_s28 = sshll.u32 %s409_s0, 4  ;;  %s45_s25 = int_to_ptr.vmem [resolvable:$true] %s44_s25  ;;  %s25_s28 = int_to_ptr.hbm [resolvable:$true] %s24_s28 }
   0x4   :  { %s323_s29 = smov 128   ;;  %s324_s30 = smov 8  }
   0x5   :  { %50 = dma.hbm_to_vmem [thread:$0]  %s43_s23, 256, %s45_s25, [#allocation5], %s323_s29, %s323_s29, %s324_s30  }
   0x6   :  { %s325_s7 = smov [#allocation2]   ;;  %s60_s11 = sshll.u32 %s411_s2, 4  ;;  %s61_s11 = int_to_ptr.hbm [resolvable:$true] %s60_s11 }
   0x7   :  { %s26_s8 = sshll.u32 %s325_s7, 4  ;;  %s78_s13 = sshll.u32 %s412_s3, 4  ;;  %s27_s8 = int_to_ptr.vmem [resolvable:$true] %s26_s8  ;;  %s79_s13 = int_to_ptr.hbm [resolvable:$true] %s78_s13 }
   0x8   :  { %32 = dma.hbm_to_vmem [thread:$0]  %s25_s28, 256, %s27_s8, [#allocation3], %s323_s29, %s323_s29, %s324_s30  }
   0x9   :  { %s326_s14 = smov [#allocation6]   ;;  %s327_s0 = smov [#allocation7]  }
   0xa   :  { %s62_s15 = sshll.u32 %s326_s14, 4  ;;  %s80_s16 = sshll.u32 %s327_s0, 4  ;;  %s63_s15 = int_to_ptr.vmem [resolvable:$true] %s62_s15  ;;  %s81_s16 = int_to_ptr.vmem [resolvable:$true] %s80_s16 }
   0xb   :  { %68 = dma.hbm_to_vmem [thread:$0]  %s61_s11, 256, %s63_s15, [#allocation5], %s323_s29, %s323_s29, %s324_s30  }
   0xc   :  { %86 = dma.hbm_to_vmem [thread:$0]  %s79_s13, 256, %s81_s16, [#allocation8], %s323_s29, %s323_s29, %s324_s30  }
   0xd   :  { %316 = dma.done.wait [#allocation3], 256  }
   0xe   :  { %317 = vsyncadd [#allocation3], 4294967040 }
   0xf   :  { %318 = dma.done.wait [#allocation5], 512  }
  0x10   :  { %319 = vsyncadd [#allocation5], 4294966784 }
  0x11   :  { %320 = dma.done.wait [#allocation8], 256  }
  0x12   :  { %321 = vsyncadd [#allocation8], 4294967040  ;;  %v123_v0 = vld [vmem:[#allocation2] sm:$0xff]  ;;  %v170_v1 = vld [vmem:[#allocation7] sm:$0xff]  ;;  %vm119_vm0 = vcmask 1024   ;;  %v328_v14 = vmov 0.0   ;;  %v135_v17 = vlaneseq }
  0x13   :  { %v150_v2 = vld [vmem:[#allocation6] sm:$0xff]  ;;  %v172_v3 = vmul.f32 %v170_v1, %v123_v0  ;;  %v125_v5 = vld [vmem:[#allocation4] sm:$0xff]  ;;  %v124_v7 = vld [vmem:[#allocation2 + $0x8] sm:$0xff]  ;;  %122 = vst.msk [vmem:[%s415_s6] sm:$0x3] %vm119_vm0, %v328_v14  ;;  %vm139_vm1 = vcmask 1041409  }
  0x14   :  { %v152_v4 = vmul.f32 %v150_v2, %v123_v0  ;;  %v127_v6 = vmul.f32 %v125_v5, %v123_v0  ;;  %v171_v8 = vld [vmem:[#allocation7 + $0x8] sm:$0xff]  ;;  %v151_v9 = vld [vmem:[#allocation6 + $0x8] sm:$0xff]  ;;  %120 = vst.msk [vmem:[%s413_s4] sm:$0x3] %vm119_vm0, %v328_v14  ;;  %v136_v19 = vand.u32 127, %v135_v17  ;;  %vm142_vm2 = vcmask 58368  }
  0x15   :  { %174 = vadd.xlane.f32.xlu2 %v172_v3  ;;  %v126_v10 = vld [vmem:[#allocation4 + $0x8] sm:$0xff]  ;;  %v173_v11 = vmul.f32 %v171_v8, %v124_v7  ;;  %v153_v12 = vmul.f32 %v151_v9, %v124_v7  ;;  %121 = vst.msk [vmem:[%s414_s5] sm:$0x3] %vm119_vm0, %v328_v14 }
  0x16   :  { %154 = vadd.xlane.f32.xlu1 %v152_v4  ;;  %129 = vadd.xlane.f32.xlu0 %v127_v6  ;;  %v128_v13 = vmul.f32 %v126_v10, %v124_v7 }
  0x1a   :  { %v187_v35 = vld [vmem:[%s415_s6] sm:$0x3] }
  0x1b   :  { %v146_v37 = vld [vmem:[%s413_s4] sm:$0x3] }
  0x1c   :  { %v167_v36 = vld [vmem:[%s414_s5] sm:$0x3] }
  0x1d   :  { %176 = vadd.xlane.f32.xlu2 %v173_v11 }
  0x1e   :  { %156 = vadd.xlane.f32.xlu1 %v153_v12  ;;  %131 = vadd.xlane.f32.xlu0 %v128_v13 }
  0x88   :  { %v175_v15 = vpop.xlane.xlu2 %174 }
  0x89   :  { %v155_v16 = vpop.xlane.xlu1 %154  ;;  %v130_v18 = vpop.xlane.xlu0 %129  ;;  %v180_v22 = vperm.slane %v175_v15, %v136_v19 }
  0x8a   :  { %v160_v23 = vperm.slane %v155_v16, %v136_v19  ;;  %v137_v27 = vperm.slane %v130_v18, %v136_v19 }
  0x90   :  { %v177_v20 = vpop.xlane.xlu2 %176 }
  0x91   :  { %v157_v21 = vpop.xlane.xlu1 %156  ;;  %v181_v24 = vperm.slane %v177_v20, %v136_v19  ;;  %v132_v26 = vpop.xlane.xlu0 %131 }
  0x92   :  { %v161_v25 = vperm.slane %v157_v21, %v136_v19  ;;  %v138_v28 = vperm.slane %v132_v26, %v136_v19 }
  0x93   :  { %v182_v29 = vsel %vm139_vm1, %v181_v24, %v180_v22 }
  0x94   :  { %v162_v30 = vsel %vm139_vm1, %v161_v25, %v160_v23  ;;  %v184_v31 = vsel %vm142_vm2, %v182_v29, 0.0  ;;  %v140_v33 = vsel %vm139_vm1, %v138_v28, %v137_v27 }
  0x95   :  { %v164_v32 = vsel %vm142_vm2, %v162_v30, 0.0  ;;  %185 = vadd.xlane.f32.xlu2 %v184_v31  ;;  %v143_v34 = vsel %vm142_vm2, %v140_v33, 0.0 }
  0x96   :  { %165 = vadd.xlane.f32.xlu1 %v164_v32  ;;  %144 = vadd.xlane.f32.xlu0 %v143_v34 }
 0x108   :  { %v186_v38 = vpop.xlane.xlu2 %185 }
 0x109   :  { %v166_v39 = vpop.xlane.xlu1 %165  ;;  %v188_v40 = vadd.f32 %v187_v35, %v186_v38  ;;  %v145_v42 = vpop.xlane.xlu0 %144 }
 0x10a   :  { %v168_v41 = vadd.f32 %v167_v36, %v166_v39  ;;  %v147_v43 = vadd.f32 %v146_v37, %v145_v42 }
 0x10b   :  { %189 = vst.msk [vmem:[%s415_s6] sm:$0x3] %vm119_vm0, %v188_v40 }
 0x10c   :  { %169 = vst.msk [vmem:[%s414_s5] sm:$0x3] %vm119_vm0, %v168_v41 }
 0x10d   :  { %149 = vst.msk [vmem:[%s413_s4] sm:$0x3] %vm119_vm0, %v147_v43 }
 0x10e   :  { %202 = vsyncpa [#allocation3], 1 }
 0x10f   :  { %203 = vsyncpa [#allocation5], 1 }
 0x110   :  { %204 = vsyncpa [#allocation8], 1 }

</bundles_post_ra>
